<compile_context>
chip_gen: v5e
topology: v5e:2x2
jax: 0.10.0
libtpu: 0.0.40
codegen_flags: <defaults>
</compile_context>

<pallas_src>
import math

import jax
import jax.numpy as jnp
from jax.experimental import pallas as pl
from jax.experimental.pallas import tpu as pltpu

_LANES = 128
_TWO_PI = 2.0 * math.pi
_INV_2_24 = 1.0 / float(1 << 24)


def _cs_mask_kernel(thresh_ref, var_ref, w_ref, bern_ref, u1_ref, u2_ref, o_ref):
    """out = w * (1 + var * z * bern)  -- fused compressed-sensing weight mask.

    thresh_ref, var_ref : SMEM scalars (int32 Bernoulli threshold, f32 std).
    w_ref               : (TR, 128) f32 weight tile.
    bern_ref            : (TR, 128) int32 raw bits in [0, 2^31); keep iff < thresh.
    u1_ref, u2_ref      : (TR, 64) int32 raw bits in [0, 2^24); one Box-Muller
                          (u1, u2) pair feeds two output lanes (cos / sin half).
    """
    var = var_ref[0]
    thresh = thresh_ref[0]

    # Integer Bernoulli: keep-mask straight from raw bits, no float conversion.
    keep = (bern_ref[...] < thresh).astype(jnp.float32)

    # Uniforms strictly inside (0, 1) from the 24-bit integer draws.
    u1 = (u1_ref[...].astype(jnp.float32) + 0.5) * _INV_2_24
    u2 = (u2_ref[...].astype(jnp.float32) + 0.5) * _INV_2_24

    # Box-Muller with sin/cos pairing: r, theta are (TR, 64); z is (TR, 128).
    r = jnp.sqrt(-2.0 * jnp.log(u1))
    theta = _TWO_PI * u2
    z = jnp.concatenate([r * jnp.cos(theta), r * jnp.sin(theta)], axis=-1)

    # where(U < prob, 1 + var*z, 1) == 1 + var*z*keep  (no select, no ones_like).
    o_ref[...] = w_ref[...] * (1.0 + var * z * keep)


def compressed_sensing_weight_forward(dense_weight, prob, var, seed=0,
                                      block_rows=1024):
    """JAX/Pallas equivalent of compressed_sensing_weight.forward(prob, var).

    NOTE: unlike PyTorch's stateful global RNG, the mask is a pure function of
    `seed`; the caller should vary `seed` per step for fresh masks.
    `var` is used as the *std* of Normal(mean=1, std=var), matching
    torch.normal(1, var, shape) in the reference.
    """
    if prob is None:
        return dense_weight

    orig_shape = dense_weight.shape
    orig_dtype = dense_weight.dtype
    n = dense_weight.size

    # Lane-dense 2-D slab; pad the flat weight up to a multiple of 128 lanes.
    rows = pl.cdiv(n, _LANES)
    n_pad = rows * _LANES
    flat = dense_weight.reshape(-1).astype(jnp.float32)
    if n_pad != n:
        flat = jnp.pad(flat, (0, n_pad - n))
    w2d = flat.reshape(rows, _LANES)

    # Row tile: large enough to pipeline, small enough for every generation's
    # scoped-VMEM default (~2 MiB/step total, double-buffered -> ~4 MiB).
    tr = min(int(block_rows), int(rows))
    grid = (pl.cdiv(rows, tr),)

    # Host-side raw random bits (independent per element, so megacore/grid
    # sharding cannot correlate tiles).
    kb, k1, k2 = jax.random.split(jax.random.PRNGKey(seed), 3)
    bern_bits = (jax.random.bits(kb, (rows, _LANES), dtype=jnp.uint32) >> 1
                 ).astype(jnp.int32)                       # [0, 2^31)
    u1_bits = (jax.random.bits(k1, (rows, _LANES // 2), dtype=jnp.uint32) >> 8
               ).astype(jnp.int32)                         # [0, 2^24)
    u2_bits = (jax.random.bits(k2, (rows, _LANES // 2), dtype=jnp.uint32) >> 8
               ).astype(jnp.int32)                         # [0, 2^24)

    # Integer Bernoulli threshold: P(bits < thresh) == prob.
    thresh_val = min(max(int(float(prob) * float(1 << 31)), 0), (1 << 31) - 1)
    thresh = jnp.asarray([thresh_val], dtype=jnp.int32)
    var_arr = jnp.asarray([float(var)], dtype=jnp.float32)

    cost = pl.CostEstimate(
        flops=8 * n_pad,
        transcendentals=2 * n_pad,
        bytes_accessed=16 * n_pad,
    )

    out2d = pl.pallas_call(
        _cs_mask_kernel,
        out_shape=jax.ShapeDtypeStruct((rows, _LANES), jnp.float32),
        grid=grid,
        in_specs=[
            pl.BlockSpec(memory_space=pltpu.SMEM),                 # thresh
            pl.BlockSpec(memory_space=pltpu.SMEM),                 # var
            pl.BlockSpec((tr, _LANES), lambda i: (i, 0)),          # weight tile
            pl.BlockSpec((tr, _LANES), lambda i: (i, 0)),          # bernoulli bits
            pl.BlockSpec((tr, _LANES // 2), lambda i: (i, 0)),     # u1 bits
            pl.BlockSpec((tr, _LANES // 2), lambda i: (i, 0)),     # u2 bits
        ],
        out_specs=pl.BlockSpec((tr, _LANES), lambda i: (i, 0)),
        compiler_params=pltpu.CompilerParams(
            dimension_semantics=("parallel",)),
        cost_estimate=cost,
    )(thresh, var_arr, w2d, bern_bits, u1_bits, u2_bits)

    out = out2d.reshape(-1)[:n].reshape(orig_shape)
    return out.astype(orig_dtype)


def init_dense_weight(key, shape):
    """kaiming_normal_(mode='fan_out', nonlinearity='relu') for a conv weight."""
    out_c, _, kh, kw = shape
    fan_out = out_c * kh * kw
    std = math.sqrt(2.0 / fan_out)
    return jax.random.normal(key, shape, dtype=jnp.float32) * std


if __name__ == "__main__":
    key = jax.random.PRNGKey(0)

    # Small conv-style parameter shape: (out_c=16, in_c=16, kh=4, kw=4)
    # prod = 4096 -> flattens to a tile-aligned (32, 128) slab.
    shape = (16, 16, 4, 4)
    dense_weight = init_dense_weight(key, shape)

    prob = 0.3
    var = 0.5

    out = compressed_sensing_weight_forward(dense_weight, prob, var, seed=42)
    out = jax.block_until_ready(out)

    assert out.shape == shape and out.dtype == jnp.float32

    # Entries where the Bernoulli test failed (mask == 1) must equal the
    # original weight exactly; roughly `prob` of the entries get perturbed.
    untouched = jnp.isclose(out, dense_weight)
    touched_frac = 1.0 - float(jnp.mean(untouched.astype(jnp.float32)))
    assert bool(jnp.any(untouched))
    assert bool(jnp.any(~untouched))
    assert 0.2 < touched_frac < 0.4, touched_frac

    # prob=None path: identity.
    ident = compressed_sensing_weight_forward(dense_weight, None, var)
    assert bool(jnp.all(ident == dense_weight))

    print("KERNEL_OK")
</pallas_src>

<mosaic_0001>
module attributes {stable_mosaic.version = 11 : i64} {
  func.func @_cs_mask_kernel(%arg0: i32, %arg1: memref<1xi32, #tpu.memory_space<smem>>, %arg2: memref<1xf32, #tpu.memory_space<smem>>, %arg3: memref<32x128xf32, #tpu.memory_space<vmem>>, %arg4: memref<32x128xi32, #tpu.memory_space<vmem>>, %arg5: memref<32x64xi32, #tpu.memory_space<vmem>>, %arg6: memref<32x64xi32, #tpu.memory_space<vmem>>, %arg7: memref<32x128xf32, #tpu.memory_space<vmem>>) attributes {dimension_semantics = [#tpu.dimension_semantics<parallel>], iteration_bounds = array<i64: 1>, scalar_prefetch = 0 : i64, scratch_operands = 0 : i64, tpu.core_type = #tpu.core_type<tc>, window_params = [{transform_indices = @transform_0, window_bounds = array<i64: 1>}, {transform_indices = @transform_1, window_bounds = array<i64: 1>}, {transform_indices = @transform_2, window_bounds = array<i64: 32, 128>}, {transform_indices = @transform_3, window_bounds = array<i64: 32, 128>}, {transform_indices = @transform_4, window_bounds = array<i64: 32, 64>}, {transform_indices = @transform_5, window_bounds = array<i64: 32, 64>}, {transform_indices = @transform_6, window_bounds = array<i64: 32, 128>}]} {
    %c0 = arith.constant 0 : index
    %0 = memref.load %arg2[%c0] : memref<1xf32, #tpu.memory_space<smem>>
    %c0_0 = arith.constant 0 : index
    %1 = memref.load %arg1[%c0_0] : memref<1xi32, #tpu.memory_space<smem>>
    %c0_1 = arith.constant 0 : index
    %c0_2 = arith.constant 0 : index
    %2 = vector.load %arg4[%c0_1, %c0_2] : memref<32x128xi32, #tpu.memory_space<vmem>>, vector<32x128xi32>
    %3 = vector.broadcast %1 : i32 to vector<32x128xi32>
    %4 = arith.cmpi slt, %2, %3 : vector<32x128xi32>
    %5 = arith.extui %4 : vector<32x128xi1> to vector<32x128xi32>
    %6 = arith.sitofp %5 : vector<32x128xi32> to vector<32x128xf32>
    %c0_3 = arith.constant 0 : index
    %c0_4 = arith.constant 0 : index
    %7 = vector.load %arg5[%c0_3, %c0_4] : memref<32x64xi32, #tpu.memory_space<vmem>>, vector<32x64xi32>
    %8 = arith.sitofp %7 : vector<32x64xi32> to vector<32x64xf32>
    %cst = arith.constant 5.000000e-01 : f32
    %9 = vector.broadcast %cst : f32 to vector<32x64xf32>
    %10 = arith.addf %8, %9 : vector<32x64xf32>
    %cst_5 = arith.constant 5.96046448E-8 : f32
    %11 = vector.broadcast %cst_5 : f32 to vector<32x64xf32>
    %12 = arith.mulf %10, %11 : vector<32x64xf32>
    %c0_6 = arith.constant 0 : index
    %c0_7 = arith.constant 0 : index
    %13 = vector.load %arg6[%c0_6, %c0_7] : memref<32x64xi32, #tpu.memory_space<vmem>>, vector<32x64xi32>
    %14 = arith.sitofp %13 : vector<32x64xi32> to vector<32x64xf32>
    %cst_8 = arith.constant 5.000000e-01 : f32
    %15 = vector.broadcast %cst_8 : f32 to vector<32x64xf32>
    %16 = arith.addf %14, %15 : vector<32x64xf32>
    %cst_9 = arith.constant 5.96046448E-8 : f32
    %17 = vector.broadcast %cst_9 : f32 to vector<32x64xf32>
    %18 = arith.mulf %16, %17 : vector<32x64xf32>
    %19 = math.log %12 : vector<32x64xf32>
    %cst_10 = arith.constant -2.000000e+00 : f32
    %20 = vector.broadcast %cst_10 : f32 to vector<32x64xf32>
    %21 = arith.mulf %20, %19 : vector<32x64xf32>
    %22 = math.sqrt %21 : vector<32x64xf32>
    %cst_11 = arith.constant 6.28318548 : f32
    %23 = vector.broadcast %cst_11 : f32 to vector<32x64xf32>
    %24 = arith.mulf %23, %18 : vector<32x64xf32>
    %25 = math.cos %24 : vector<32x64xf32>
    %26 = arith.mulf %22, %25 : vector<32x64xf32>
    %27 = math.sin %24 : vector<32x64xf32>
    %28 = arith.mulf %22, %27 : vector<32x64xf32>
    %29 = tpu.concatenate %26, %28 in 1 : vector<32x64xf32>, vector<32x64xf32> -> vector<32x128xf32>
    %c0_12 = arith.constant 0 : index
    %c0_13 = arith.constant 0 : index
    %30 = vector.load %arg3[%c0_12, %c0_13] : memref<32x128xf32, #tpu.memory_space<vmem>>, vector<32x128xf32>
    %31 = vector.broadcast %0 : f32 to vector<32x128xf32>
    %32 = arith.mulf %31, %29 : vector<32x128xf32>
    %33 = arith.mulf %32, %6 : vector<32x128xf32>
    %cst_14 = arith.constant 1.000000e+00 : f32
    %34 = vector.broadcast %cst_14 : f32 to vector<32x128xf32>
    %35 = arith.addf %34, %33 : vector<32x128xf32>
    %36 = arith.mulf %30, %35 : vector<32x128xf32>
    %c0_15 = arith.constant 0 : index
    %c0_16 = arith.constant 0 : index
    %37 = vector.load %arg7[%c0_15, %c0_16] : memref<32x128xf32, #tpu.memory_space<vmem>>, vector<32x128xf32>
    tpu.vector_store %arg7[%c0_15, %c0_16], %36 {strides = array<i32>} : memref<32x128xf32, #tpu.memory_space<vmem>>, vector<32x128xf32>,
    return
  }
  func.func @transform_0(%arg0: i32) -> i32 {
    %c0_i32 = arith.constant 0 : i32
    %c0_i32_0 = arith.constant 0 : i32
    return %c0_i32 : i32
  }
  func.func @transform_1(%arg0: i32) -> i32 {
    %c0_i32 = arith.constant 0 : i32
    %c0_i32_0 = arith.constant 0 : i32
    return %c0_i32 : i32
  }
  func.func @transform_2(%arg0: i32) -> (i32, i32) {
    %c0_i32 = arith.constant 0 : i32
    %c0_i32_0 = arith.constant 0 : i32
    return %arg0, %c0_i32 : i32, i32
  }
  func.func @transform_3(%arg0: i32) -> (i32, i32) {
    %c0_i32 = arith.constant 0 : i32
    %c0_i32_0 = arith.constant 0 : i32
    return %arg0, %c0_i32 : i32, i32
  }
  func.func @transform_4(%arg0: i32) -> (i32, i32) {
    %c0_i32 = arith.constant 0 : i32
    %c0_i32_0 = arith.constant 0 : i32
    return %arg0, %c0_i32 : i32, i32
  }
  func.func @transform_5(%arg0: i32) -> (i32, i32) {
    %c0_i32 = arith.constant 0 : i32
    %c0_i32_0 = arith.constant 0 : i32
    return %arg0, %c0_i32 : i32, i32
  }
  func.func @transform_6(%arg0: i32) -> (i32, i32) {
    %c0_i32 = arith.constant 0 : i32
    %c0_i32_0 = arith.constant 0 : i32
    return %arg0, %c0_i32 : i32, i32
  }
}

</mosaic_0001>

<bundles_post_ra>
// kernel: tpu_custom_call.1
= control target key start
LH: loop header
LB: loop body
LE: loop exit
PB: predicated region body
PF: predicated region fallthrough
CT: control target
= control target key end

     0   :  { %13 = vsyncpa [#allocation5], 0  ;;  %s2371_s0 = inlined_call_operand.<no memory space> [shape: s32[1], index: 0, kind: input, shape index: {}]   ;;  %s2372_s1 = inlined_call_operand.<no memory space> [shape: f32[1], index: 1, kind: input, shape index: {}]   ;;  %s2373_s2 = inlined_call_operand.hbm [shape: f32[32,128], index: 2, kind: input, shape index: {}]   ;;  %s2374_s3 = inlined_call_operand.hbm [shape: s32[32,128], index: 3, kind: input, shape index: {}]   ;;  %s2375_s4 = inlined_call_operand.hbm [shape: s32[32,64], index: 4, kind: input, shape index: {}]   ;;  %s2376_s5 = inlined_call_operand.hbm [shape: s32[32,64], index: 5, kind: input, shape index: {}]   ;;  %s2377_s6 = inlined_call_operand.hbm [shape: f32[32,128], index: 6, kind: output, shape index: {}]  }
   0x1   :  { %14 = vsyncpa [#allocation8], 0 }
   0x2   :  { %15 = vsyncpa [#allocation11], 0 }
   0x3   :  { %16 = vsyncpa [#allocation6], 0  ;;  %s38_s23 = sshll.u32 %s2374_s3, 4  ;;  %s1703_s24 = smov [#allocation7]   ;;  %s39_s23 = int_to_ptr.hbm [resolvable:$true] %s38_s23 }
   0x4   :  { %s40_s25 = sshll.u32 %s1703_s24, 4  ;;  %s25_s28 = sshll.u32 %s2373_s2, 4  ;;  %s41_s25 = int_to_ptr.vmem [resolvable:$true] %s40_s25  ;;  %s26_s28 = int_to_ptr.hbm [resolvable:$true] %s25_s28 }
   0x5   :  { %s1704_s29 = smov 128   ;;  %s1705_s30 = smov 8  }
   0x6   :  { %46 = dma.hbm_to_vmem [thread:$0]  %s39_s23, 512, %s41_s25, [#allocation8], %s1704_s29, %s1704_s29, %s1705_s30  }
   0x7   :  { %s1706_s7 = smov [#allocation4]   ;;  %s51_s3 = sshll.u32 %s2375_s4, 4  ;;  %s52_s3 = int_to_ptr.hbm [resolvable:$true] %s51_s3 }
   0x8   :  { %s27_s8 = sshll.u32 %s1706_s7, 4  ;;  %s64_s12 = sshll.u32 %s2376_s5, 4  ;;  %s28_s8 = int_to_ptr.vmem [resolvable:$true] %s27_s8  ;;  %s65_s12 = int_to_ptr.hbm [resolvable:$true] %s64_s12 }
   0x9   :  { %33 = dma.hbm_to_vmem [thread:$0]  %s26_s28, 512, %s28_s8, [#allocation5], %s1704_s29, %s1704_s29, %s1705_s30  }
   0xa   :  { %s1707_s13 = smov [#allocation9]   ;;  %s1708_s15 = smov [#allocation10]  }
   0xb   :  { %s53_s14 = sshll.u32 %s1707_s13, 4  ;;  %s66_s4 = sshll.u32 %s1708_s15, 4  ;;  %s54_s14 = int_to_ptr.vmem [resolvable:$true] %s53_s14  ;;  %s67_s4 = int_to_ptr.vmem [resolvable:$true] %s66_s4 }
   0xc   :  { %59 = dma.hbm_to_vmem [thread:$0]  %s52_s3, 512, %s54_s14, [#allocation8], %s1704_s29, %s1704_s29, %s1705_s30  }
   0xd   :  { %72 = dma.hbm_to_vmem [thread:$0]  %s65_s12, 512, %s67_s4, [#allocation11], %s1704_s29, %s1704_s29, %s1705_s30  }
   0xe   :  { %1695 = dma.done.wait [#allocation5], 512  }
   0xf   :  { %1696 = vsyncadd [#allocation5], 4294966784 }
  0x10   :  { %1697 = dma.done.wait [#allocation8], 1024  }
  0x11   :  { %1698 = vsyncadd [#allocation8], 4294966272 }
  0x12   :  { %1699 = dma.done.wait [#allocation11], 512  }
  0x13   :  { %1700 = vsyncadd [#allocation11], 4294966784  ;;  %v110_v0 = vld [vmem:[#allocation9 + $0x10] sm:$0xff]  ;;  %v124_v2 = vld [vmem:[#allocation10] sm:$0xff]  ;;  %v1709_v37 = vmov 683565275  }
  0x14   :  { %v126_v1 = vld [vmem:[#allocation10 + $0x10] sm:$0xff]  ;;  %v128_v4 = vcvt.s32.f32 %v124_v2  ;;  %v114_v5 = vcvt.s32.f32 %v110_v0  ;;  %v127_v16 = vld [vmem:[#allocation10 + $0x18] sm:$0xff]  ;;  %v1710_v39 = vmov 2475754826   ;;  %v1711_v41 = vmov 2131351028  }
  0x15   :  { %v130_v3 = vcvt.s32.f32 %v126_v1  ;;  %v131_v21 = vcvt.s32.f32 %v127_v16  ;;  %v1712_v44 = vmov 2102212464   ;;  %v1713_v46 = vmov 920167782   ;;  %s1716_s5 = smov 64   ;;  %s1500_s22 = sshll.u32 %s2377_s6, 4  ;;  %s1501_s22 = int_to_ptr.hbm [resolvable:$true] %s1500_s22 }
  0x16   :  { %v132_v7 = vadd.f32 0.5, %v128_v4  ;;  %v118_v10 = vadd.f32 0.5, %v114_v5  ;;  %v1714_v54 = vmov 1326507024  }
  0x17   :  { %v134_v6 = vadd.f32 0.5, %v130_v3  ;;  %v135_v27 = vadd.f32 0.5, %v131_v21 }
  0x18   :  { %v136_v9 = vmul.f32 5.9604645e-08, %v132_v7  ;;  %v122_v14 = vmul.f32 5.9604645e-08, %v118_v10 }
  0x19   :  { %v138_v8 = vmul.f32 5.9604645e-08, %v134_v6  ;;  %v139_v35 = vmul.f32 5.9604645e-08, %v135_v27 }
  0x1a   :  { %v1780_v12 = vmul.f32 6.2831855, %v136_v9  ;;  %1559 = vlog2.f32 %v122_v14 }
  0x1b   :  { %v1778_v11 = vmul.f32 6.2831855, %v138_v8 }
  0x1c   :  { %v207_v15 = vand.u32 2139095040, %v1780_v12  ;;  %v204_v24 = vand.u32 2147483647, %v1780_v12 }
  0x1d   :  { %v515_v13 = vand.u32 2139095040, %v1778_v11  ;;  %v512_v18 = vand.u32 2147483647, %v1778_v11 }
  0x1e   :  { %v208_v19 = vshrl.u32 %v207_v15, 23  ;;  %v211_v29 = vand.u32 8388607, %v204_v24 }
  0x1f   :  { %v516_v17 = vshrl.u32 %v515_v13, 23  ;;  %v519_v25 = vand.u32 8388607, %v512_v18 }
  0x20   :  { %v1519_v22 = vadd.s32 4294967169, %v208_v19  ;;  %v1560_v30 = vpop.eup %1559  ;;  %v212_v48 = vor.u32 8388608, %v211_v29 }
  0x21   :  { %v1525_v20 = vadd.s32 4294967169, %v516_v17  ;;  %v520_v31 = vor.u32 8388608, %v519_v25  ;;  %v145_v43 = vmul.f32 0.6931472, %v1560_v30 }
  0x22   :  { %v214_v26 = vadd.s32 1, %v1519_v22  ;;  %v1820_v22 = vshll.u32 %v212_v48, 8 }
  0x23   :  { %v522_v23 = vadd.s32 1, %v1525_v20  ;;  %v1798_v52 = vshll.u32 %v520_v31, 8  ;;  %v1807_v2 = vmul.f32 -2.0, %v145_v43  ;;  %v108_v43 = vld [vmem:[#allocation9] sm:$0xff] }
  0x24   :  { %vm215_vm1 = vcmp.gt.s32.totalorder %v214_v26, 0 }
  0x25   :  { %vm523_vm0 = vcmp.gt.s32.totalorder %v522_v23, 0  ;;  %v216_v34 = vsel %vm215_vm1, %v214_v26, 0  ;;  %v561_v5 = vand.u32 65535, %v1798_v52  ;;  %v562_v8 = vshrl.u32 %v1798_v52, 16 }
  0x26   :  { %v524_v28 = vsel %vm523_vm0, %v522_v23, 0  ;;  %v1802_v56 = vand.u32 31, %v216_v34  ;;  %1561 = vrsqrt.f32 %v1807_v2  ;;  %v1818_v21 = vshrl.u32 %v216_v34, 5 }
  0x27   :  { %v526_v32 = vand.u32 31, %v524_v28  ;;  %v525_v33 = vshrl.u32 %v524_v28, 5  ;;  %v1822_v23 = vmul.f32 6.2831855, %v139_v35 }
  0x28   :  { %v1812_v9 = vsub.s32 32, %v1802_v56  ;;  %vm236_vm10 = vcmp.lt.s32.totalorder %v1818_v21, 1  ;;  %vm238_vm12 = vcmp.lt.s32.totalorder %v1818_v21, 3  ;;  %vm239_vm13 = vcmp.lt.s32.totalorder %v1818_v21, 4 }
  0x29   :  { %v527_v36 = vsub.s32 32, %v526_v32  ;;  %v529_v38 = vshll.u32 %v1709_v37, %v526_v32  ;;  %v532_v40 = vshll.u32 %v1710_v39, %v526_v32  ;;  %v535_v42 = vshll.u32 %v1711_v41, %v526_v32 }
  0x2a   :  { %v538_v45 = vshll.u32 %v1712_v44, %v526_v32  ;;  %v541_v47 = vshll.u32 %v1713_v46, %v526_v32  ;;  %vm544_vm2 = vcmp.lt.s32.totalorder %v525_v33, 1  ;;  %vm547_vm3 = vcmp.lt.s32.totalorder %v525_v33, 4 }
  0x2b   :  { %v530_v49 = vshrl.u32 %v1710_v39, %v527_v36  ;;  %v533_v50 = vshrl.u32 %v1711_v41, %v527_v36  ;;  %v536_v51 = vshrl.u32 %v1712_v44, %v527_v36  ;;  %v539_v53 = vshrl.u32 %v1713_v46, %v527_v36 }
  0x2c   :  { %v542_v55 = vshrl.u32 %v1714_v54, %v527_v36  ;;  %v528_v60 = vshrl.u32 %v1709_v37, %v527_v36  ;;  %vm546_vm4 = vcmp.lt.s32.totalorder %v525_v33, 3  ;;  %vm545_vm5 = vcmp.lt.s32.totalorder %v525_v33, 2 }
  0x2d   :  { %v531_v57 = vor.u32 %v530_v49, %v529_v38  ;;  %v534_v58 = vor.u32 %v533_v50, %v532_v40  ;;  %v537_v59 = vor.u32 %v536_v51, %v535_v42  ;;  %v540_v61 = vor.u32 %v539_v53, %v538_v45  ;;  %v1833_v50 = vpop.eup %1561 }
  0x2e   :  { %v543_v62 = vor.u32 %v542_v55, %v541_v47  ;;  %v221_v32 = vshll.u32 %v1709_v37, %v1802_v56  ;;  %v222_v40 = vshrl.u32 %v1710_v39, %v1812_v9  ;;  %v224_v45 = vshll.u32 %v1710_v39, %v1802_v56 }
  0x2f   :  { %v549_v63 = vsel %vm547_vm3, %v537_v59, 2102212464  ;;  %v552_v0 = vsel %vm544_vm2, %v531_v57, %v534_v58  ;;  %v556_v1 = vsel %vm544_vm2, %v534_v58, %v537_v59  ;;  %v553_v3 = vsel %vm547_vm3, %v540_v61, 920167782 }
  0x30   :  { %v557_v4 = vsel %vm547_vm3, %v543_v62, 1326507024  ;;  %v554_v6 = vsel %vm546_vm4, %v537_v59, %v553_v3  ;;  %v548_v10 = vsel %vm544_vm2, %v528_v60, %v531_v57  ;;  %v550_v13 = vsel %vm546_vm4, %v534_v58, %v549_v63 }
  0x31   :  { %v558_v7 = vsel %vm546_vm4, %v540_v61, %v557_v4  ;;  %v555_v14 = vsel %vm545_vm5, %v552_v0, %v554_v6  ;;  %v1825_v25 = vsel %vm545_vm5, %v548_v10, %v550_v13  ;;  %v1715_v51 = vmov 0  }
  0x32   :  { %v559_v15 = vsel %vm545_vm5, %v556_v1, %v558_v7  ;;  %v585_v19 = vand.u32 65535, %v555_v14  ;;  %v586_v20 = vshrl.u32 %v555_v14, 16  ;;  %v112_v60 = vcvt.s32.f32 %v108_v43 }
  0x33   :  { %v563_v16 = vand.u32 65535, %v559_v15  ;;  %v564_v17 = vshrl.u32 %v559_v15, 16  ;;  %v225_v6 = vshrl.u32 %v1711_v41, %v1812_v9  ;;  %v227_v7 = vshll.u32 %v1711_v41, %v1802_v56 }
  0x34   :  { %v587_v29 = vmul.u32 %v585_v19, %v561_v5  ;;  %v588_v30 = vmul.u32 %v586_v20, %v561_v5  ;;  %v589_v31 = vmul.u32 %v585_v19, %v562_v8  ;;  %v590_v42 = vmul.u32 %v586_v20, %v562_v8 }
  0x35   :  { %v565_v26 = vmul.u32 %v563_v16, %v561_v5  ;;  %v566_v27 = vmul.u32 %v564_v17, %v561_v5  ;;  %v567_v28 = vmul.u32 %v563_v16, %v562_v8  ;;  %v568_v36 = vmul.u32 %v564_v17, %v562_v8 }
  0x36   :  { %v591_v33 = vshll.u32 %v588_v30, 16  ;;  %v593_v49 = vshll.u32 %v589_v31, 16  ;;  %v592_v55 = vshrl.u32 %v588_v30, 16  ;;  %v594_v62 = vshrl.u32 %v589_v31, 16 }
  0x37   :  { %v569_v38 = vshll.u32 %v566_v27, 16  ;;  %v571_v34 = vshll.u32 %v567_v28, 16  ;;  %v570_v35 = vshrl.u32 %v566_v27, 16  ;;  %v572_v47 = vshrl.u32 %v567_v28, 16 }
  0x38   :  { %vm595_vm7 = vc.u32 %v587_v29, %v591_v33  ;;  %v597_v57 = vadd.s32 %v591_v33, %v587_v29  ;;  %v116_v4 = vadd.f32 0.5, %v112_v60  ;;  %v228_v8 = vshrl.u32 %v1712_v44, %v1812_v9 }
  0x39   :  { %vm573_vm6 = vc.u32 %v565_v26, %v569_v38  ;;  %v575_v48 = vadd.s32 %v569_v38, %v565_v26  ;;  %v596_v59 = vsel %vm595_vm7, 1, %v1715_v51  ;;  %v230_v14 = vshll.u32 %v1712_v44, %v1802_v56 }
  0x3a   :  { %v574_v53 = vsel %vm573_vm6, 1, %v1715_v51  ;;  %v598_v63 = vadd.s32 %v596_v59, %v590_v42  ;;  %vm599_vm9 = vc.u32 %v597_v57, %v593_v49  ;;  %v1839_v3 = vadd.s32 %v597_v57, %v593_v49 }
  0x3b   :  { %v576_v58 = vadd.s32 %v574_v53, %v568_v36  ;;  %vm577_vm8 = vc.u32 %v575_v48, %v571_v34  ;;  %v600_v1 = vsel %vm599_vm9, 1, %v1715_v51  ;;  %v120_v13 = vmul.f32 5.9604645e-08, %v116_v4 }
  0x3c   :  { %v578_v61 = vsel %vm577_vm8, 1, %v1715_v51  ;;  %v602_v5 = vadd.s32 %v600_v1, %v598_v63  ;;  %v231_v15 = vshrl.u32 %v1713_v46, %v1812_v9  ;;  %v223_v17 = vor.u32 %v222_v40, %v221_v32 }
  0x3d   :  { %v580_v0 = vadd.s32 %v578_v61, %v576_v58  ;;  %v1851_v19 = vor.u32 %v225_v6, %v224_v45  ;;  %v233_v20 = vshll.u32 %v1713_v46, %v1802_v56  ;;  %v229_v27 = vor.u32 %v228_v8, %v227_v7 }
  0x3e   :  { %v603_v16 = vadd.s32 %v602_v5, %v592_v55  ;;  %v232_v28 = vor.u32 %v231_v15, %v230_v14  ;;  %v234_v29 = vshrl.u32 %v1714_v54, %v1812_v9  ;;  %v605_v31 = vmul.u32 %v1798_v52, %v1825_v25 }
  0x3f   :  { %v581_v10 = vadd.s32 %v580_v0, %v570_v35  ;;  %1563 = vlog2.f32 %v120_v13  ;;  %v177_v56 = vmul.f32 %v1833_v50, %v1807_v2  ;;  %vm237_vm14 = vcmp.lt.s32.totalorder %v1818_v21, 2 }
  0x40   :  { %v604_v30 = vadd.s32 %v603_v16, %v594_v62  ;;  %v235_v32 = vor.u32 %v234_v29, %v233_v20  ;;  %v244_v52 = vsel %vm236_vm10, %v223_v17, %v1851_v19  ;;  %v245_v25 = vsel %vm239_vm13, %v232_v28, 920167782 }
  0x41   :  { %v1855_v26 = vadd.s32 %v581_v10, %v572_v47  ;;  %v248_v38 = vsel %vm236_vm10, %v1851_v19, %v229_v27  ;;  %v246_v35 = vsel %vm238_vm12, %v229_v27, %v245_v25  ;;  %v669_v33 = vand.u32 2139095040, %v1822_v23 }
  0x42   :  { %v608_v36 = vadd.s32 1, %v604_v30  ;;  %v249_v34 = vsel %vm239_vm13, %v235_v32, 1326507024  ;;  %v247_v45 = vsel %vm237_vm14, %v244_v52, %v246_v35  ;;  %v253_v48 = vand.u32 65535, %v1820_v22 }
  0x43   :  { %vm607_vm11 = vc.u32 %v1855_v26, %v1839_v3  ;;  %v250_v42 = vsel %vm238_vm12, %v232_v28, %v249_v34  ;;  %v178_v53 = vmul.f32 %v1833_v50, %v177_v56  ;;  %v220_v55 = vshrl.u32 %v1709_v37, %v1812_v9 }
  0x44   :  { %v609_v40 = vsel %vm607_vm11, %v608_v36, %v604_v30  ;;  %v251_v47 = vsel %vm237_vm14, %v248_v38, %v250_v42  ;;  %v254_v57 = vshrl.u32 %v1820_v22, 16  ;;  %v278_v61 = vshrl.u32 %v247_v45, 16 }
  0x45   :  { %v610_v43 = vadd.s32 %v609_v40, %v605_v31  ;;  %v1564_v49 = vpop.eup %1563  ;;  %v255_v58 = vand.u32 65535, %v251_v47  ;;  %v256_v60 = vshrl.u32 %v251_v47, 16  ;;  %v277_v63 = vand.u32 65535, %v247_v45 }
  0x46   :  { %v141_v1 = vmul.f32 0.6931472, %v1564_v49  ;;  %v179_v6 = vmul.f32 0.5, %v178_v53  ;;  %v240_v7 = vsel %vm236_vm10, %v220_v55, %v223_v17  ;;  %v280_v8 = vmul.u32 %v278_v61, %v253_v48 }
  0x47   :  { %v611_v59 = vadd.s32 536870912, %v610_v43  ;;  %v259_v62 = vmul.u32 %v255_v58, %v254_v57  ;;  %v257_v4 = vmul.u32 %v255_v58, %v253_v48  ;;  %v258_v5 = vmul.u32 %v256_v60, %v253_v48 }
  0x48   :  { %v670_v10 = vshrl.u32 %v669_v33, 23  ;;  %v260_v13 = vmul.u32 %v256_v60, %v254_v57  ;;  %v241_v16 = vsel %vm239_vm13, %v229_v27, 2102212464  ;;  %v279_v20 = vmul.u32 %v277_v63, %v253_v48 }
  0x49   :  { %v1893_v0 = vshrl.u32 %v611_v59, 30  ;;  %v261_v14 = vshll.u32 %v258_v5, 16  ;;  %v263_v15 = vshll.u32 %v259_v62, 16  ;;  %v281_v28 = vmul.u32 %v277_v63, %v254_v57 }
  0x4a   :  { %v283_v29 = vshll.u32 %v280_v8, 16  ;;  %v1900_v31 = vmul.f32 -2.0, %v141_v1  ;;  %v262_v56 = vshrl.u32 %v258_v5, 16  ;;  %v282_v36 = vmul.u32 %v278_v61, %v254_v57 }
  0x4b   :  { %v613_v9 = vshll.u32 %v1893_v0, 30  ;;  %vm265_vm15 = vc.u32 %v257_v4, %v261_v14  ;;  %v267_v32 = vadd.s32 %v261_v14, %v257_v4  ;;  %v285_v52 = vshll.u32 %v281_v28, 16 }
  0x4c   :  { %v266_v17 = vsel %vm265_vm15, 1, %v1715_v51  ;;  %v242_v27 = vsel %vm238_vm12, %v1851_v19, %v241_v16  ;;  %vm287_vm2 = vc.u32 %v279_v20, %v283_v29  ;;  %v289_v40 = vadd.s32 %v283_v29, %v279_v20 }
  0x4d   :  { %v614_v30 = vsub.s32 %v610_v43, %v613_v9  ;;  %v268_v38 = vadd.s32 %v266_v17, %v260_v13  ;;  %vm269_vm1 = vc.u32 %v267_v32, %v263_v15  ;;  %1565 = vrsqrt.f32 %v1900_v31 }
  0x4e   :  { %v270_v34 = vsel %vm269_vm1, 1, %v1715_v51  ;;  %v288_v33 = vsel %vm287_vm2, 1, %v1715_v51  ;;  %v284_v45 = vshrl.u32 %v280_v8, 16  ;;  %vm291_vm3 = vc.u32 %v289_v40, %v285_v52 }
  0x4f   :  { %vm615_vm0 = vcmp.lt.s32.totalorder %v614_v30, 0  ;;  %v616_v25 = vsub.s32 0, %v614_v30  ;;  %v272_v42 = vadd.s32 %v270_v34, %v268_v38  ;;  %v290_v47 = vadd.s32 %v288_v33, %v282_v36 }
  0x50   :  { %v264_v48 = vshrl.u32 %v259_v62, 16  ;;  %v292_v53 = vsel %vm291_vm3, 1, %v1715_v51  ;;  %v1528_v55 = vadd.s32 4294967169, %v670_v10  ;;  %v286_v57 = vshrl.u32 %v281_v28, 16 }
  0x51   :  { %v617_v35 = vsel %vm615_vm0, %v616_v25, %v614_v30  ;;  %v273_v49 = vadd.s32 %v272_v42, %v262_v56  ;;  %v294_v58 = vadd.s32 %v292_v53, %v290_v47  ;;  %v180_v59 = vsub.f32 1.5, %v179_v6 }
  0x52   :  { %v618_v43 = vclz %v617_v35  ;;  %v606_v60 = vadd.s32 %v1839_v3, %v1855_v26  ;;  %v636_v61 = vsub.s32 4, %v1893_v0  ;;  %v243_v63 = vsel %vm237_vm14, %v240_v7, %v242_v27 }
  0x53   :  { %v295_v1 = vadd.s32 %v294_v58, %v284_v45  ;;  %v1915_v4 = vpop.eup %1565  ;;  %v1917_v5 = vadd.s32 %v273_v49, %v264_v48  ;;  %v1919_v8 = vadd.s32 %v289_v40, %v285_v52  ;;  %v676_v10 = vadd.s32 1, %v1528_v55  ;;  %v1953_v45 = vld [vmem:[#allocation10 + $0x8] sm:$0xff] }
  0x54   :  { %v1526_v19 = vadd.s32 4294967294, %v618_v43  ;;  %v181_v3 = vmul.f32 %v1833_v50, %v180_v59  ;;  %vm514_vm5 = vcmp.lt.s32.totalorder %v1778_v11, 0  ;;  %v297_v7 = vmul.u32 %v1820_v22, %v243_v63 }
  0x55   :  { %v296_v14 = vadd.s32 %v295_v1, %v286_v57  ;;  %vm1926_vm6 = vcmp.le.f32.partialorder %v512_v18, 0.7853982  ;;  %v153_v16 = vmul.f32 %v1915_v4, %v1900_v31  ;;  %vm299_vm7 = vc.u32 %v1917_v5, %v1919_v8 }
  0x56   :  { %vm1527_vm4 = vcmp.lt.s32.totalorder %v1526_v19, 0  ;;  %v637_v29 = vsel %vm514_vm5, %v636_v61, %v1893_v0  ;;  %vm677_vm8 = vcmp.gt.s32.totalorder %v676_v10, 0  ;;  %v182_v22 = vmul.f32 %v181_v3, %v1807_v2 }
  0x57   :  { %v621_v62 = vsel %vm1527_vm4, 0, %v1526_v19  ;;  %v300_v20 = vadd.s32 1, %v296_v14  ;;  %vm183_vm9 = vcmp.eq.f32.partialorder %v1807_v2, inf  ;;  %v678_v36 = vsel %vm677_vm8, %v676_v10, 0 }
  0x58   :  { %v622_v9 = vsub.s32 32, %v621_v62  ;;  %v623_v6 = vshll.u32 %v614_v30, %v621_v62  ;;  %v626_v13 = vsub.s32 4294967266, %v621_v62  ;;  %v666_v30 = vand.u32 2147483647, %v1822_v23 }
  0x59   :  { %v301_v18 = vsel %vm299_vm7, %v300_v20, %v296_v14  ;;  %v1942_v52 = vsel %vm1926_vm6, 0, %v637_v29  ;;  %v154_v25 = vmul.f32 %v1915_v4, %v153_v16  ;;  %v184_v27 = vsel %vm183_vm9, %v1807_v2, %v182_v22 }
  0x5a   :  { %v624_v26 = vshrl.u32 %v606_v60, %v622_v9  ;;  %v627_v21 = vadd.s32 127, %v626_v13  ;;  %v302_v17 = vadd.s32 %v301_v18, %v297_v7  ;;  %vm185_vm10 = vcmp.eq.f32.partialorder %v1807_v2, 0.0 }
  0x5b   :  { %v186_v34 = vand.u32 2147483648, %v1807_v2  ;;  %v680_v40 = vand.u32 31, %v678_v36  ;;  %v1278_v42 = vadd.s32 3, %v1942_v52  ;;  %v673_v43 = vand.u32 8388607, %v666_v30 }
  0x5c   :  { %v625_v50 = vor.u32 %v624_v26, %v623_v6  ;;  %v628_v28 = vshll.u32 %v627_v21, 23  ;;  %v303_v0 = vadd.s32 536870912, %v302_v17  ;;  %v1955_v47 = vmul.f32 0.5, %v154_v25  ;;  %v111_v6 = vld [vmem:[#allocation9 + $0x18] sm:$0xff] }
  0x5d   :  { %v1958_v53 = vsel %vm185_vm10, %v186_v34, %v184_v27  ;;  %v1960_v55 = vsub.s32 32, %v680_v40  ;;  %v129_v2 = vcvt.s32.f32 %v1953_v45  ;;  %v1965_v57 = vand.u32 3, %v1278_v42 }
  0x5e   :  { %v629_v32 = vor.u32 4788187, %v628_v28  ;;  %v632_v56 = vcvt.s32.f32 %v625_v50  ;;  %v1949_v33 = vshrl.u32 %v303_v0, 30  ;;  %v674_v59 = vor.u32 8388608, %v673_v43 }
  0x5f   :  { %v156_v61 = vsub.f32 1.5, %v1955_v47  ;;  %v1975_v63 = vshrl.u32 %v678_v36, 5  ;;  %v683_v1 = vshll.u32 %v1709_v37, %v680_v40  ;;  %v686_v9 = vshll.u32 %v1710_v39, %v680_v40 }
  0x60   :  { %v630_v38 = vand.u32 2147483647, %v629_v32  ;;  %v305_v49 = vshll.u32 %v1949_v33, 30  ;;  %v684_v13 = vshrl.u32 %v1710_v39, %v1960_v55  ;;  %v689_v14 = vshll.u32 %v1711_v41, %v680_v40 }
  0x61   :  { %v692_v3 = vshll.u32 %v1712_v44, %v680_v40  ;;  %v693_v26 = vshrl.u32 %v1713_v46, %v1960_v55  ;;  %v687_v16 = vshrl.u32 %v1711_v41, %v1960_v55  ;;  %v690_v50 = vshrl.u32 %v1712_v44, %v1960_v55 }
  0x62   :  { %v633_v35 = vmul.f32 %v632_v56, %v630_v38  ;;  %v1967_v58 = vsub.s32 %v302_v17, %v305_v49  ;;  %v695_v28 = vshll.u32 %v1713_v46, %v680_v40  ;;  %v696_v29 = vshrl.u32 %v1714_v54, %v1960_v55 }
  0x63   :  { %v298_v32 = vadd.s32 %v1919_v8, %v1917_v5  ;;  %v115_v56 = vcvt.s32.f32 %v111_v6  ;;  %vm1284_vm12 = vcmp.eq.s32.totalorder %v1965_v57, 2  ;;  %v2000_v36 = vor.u32 %v684_v13, %v683_v1 }
  0x64   :  { %v634_v48 = vxor.u32 2147483648, %v633_v35  ;;  %vm307_vm11 = vcmp.lt.s32.totalorder %v1967_v58, 0  ;;  %v308_v10 = vsub.s32 0, %v1967_v58  ;;  %v694_v25 = vor.u32 %v693_v26, %v692_v3 }
  0x65   :  { %v2002_v38 = vshll.u32 %v674_v59, 8  ;;  %v2004_v34 = vor.u32 %v687_v16, %v686_v9  ;;  %vm701_vm13 = vcmp.lt.s32.totalorder %v1975_v63, 4  ;;  %vm1281_vm14 = vcmp.eq.s32.totalorder %v1965_v57, 0 }
  0x66   :  { %v635_v19 = vsel %vm514_vm5, %v634_v48, %v633_v35  ;;  %v309_v15 = vsel %vm307_vm11, %v308_v10, %v1967_v58  ;;  %v2008_v40 = vor.u32 %v690_v50, %v689_v14  ;;  %v697_v5 = vor.u32 %v696_v29, %v695_v28 }
  0x67   :  { %v1972_v60 = vsel %vm1926_vm6, %v1778_v11, %v635_v19  ;;  %v310_v20 = vclz %v309_v15  ;;  %vm698_vm0 = vcmp.lt.s32.totalorder %v1975_v63, 1  ;;  %vm700_vm1 = vcmp.lt.s32.totalorder %v1975_v63, 3 }
  0x68   :  { %v640_v62 = vmul.f32 %v1972_v60, %v1972_v60  ;;  %vm655_vm2 = vweird.f32 %v1778_v11  ;;  %v707_v19 = vsel %vm701_vm13, %v694_v25, 920167782  ;;  %v119_v10 = vadd.f32 0.5, %v115_v56 }
  0x69   :  { %v1520_v17 = vadd.s32 4294967294, %v310_v20  ;;  %vm699_vm3 = vcmp.lt.s32.totalorder %v1975_v63, 2  ;;  %v706_v13 = vsel %vm698_vm0, %v2000_v36, %v2004_v34  ;;  %vm206_vm4 = vcmp.lt.s32.totalorder %v1780_v12, 0 }
  0x6a   :  { %v641_v21 = vmul.f32 -0.001358992, %v640_v62  ;;  %v648_v7 = vmul.f32 -0.00019511016, %v640_v62  ;;  %v711_v26 = vsel %vm701_vm13, %v697_v5, 1326507024 }
  0x6b   :  { %vm1521_vm15 = vcmp.lt.s32.totalorder %v1520_v17, 0  ;;  %vm2035_vm5 = vcmp.le.f32.partialorder %v204_v24, 0.7853982  ;;  %v712_v16 = vsel %vm700_vm1, %v694_v25, %v711_v26  ;;  %v715_v20 = vand.u32 65535, %v2002_v38 }
  0x6c   :  { %v642_v22 = vadd.f32 0.041655596, %v641_v21  ;;  %v649_v18 = vadd.f32 0.008332121, %v648_v7  ;;  %v313_v42 = vsel %vm1521_vm15, 0, %v1520_v17  ;;  %v716_v24 = vshrl.u32 %v2002_v38, 16 }
  0x6d   :  { %v314_v43 = vsub.s32 32, %v313_v42  ;;  %v315_v48 = vshll.u32 %v1967_v58, %v313_v42  ;;  %v318_v49 = vsub.s32 4294967266, %v313_v42  ;;  %v710_v58 = vsel %vm698_vm0, %v2004_v34, %v2008_v40 }
  0x6e   :  { %v643_v0 = vmul.f32 %v642_v22, %v640_v62  ;;  %v650_v27 = vmul.f32 %v649_v18, %v640_v62  ;;  %v713_v29 = vsel %vm699_vm3, %v710_v58, %v712_v16  ;;  %vm1280_vm6 = vcmp.lt.s32.totalorder %v1965_v57, 2 }
  0x6f   :  { %v316_v9 = vshrl.u32 %v298_v32, %v314_v43  ;;  %v319_v6 = vadd.s32 127, %v318_v49  ;;  %v717_v56 = vand.u32 65535, %v713_v29  ;;  %v123_v25 = vmul.f32 5.9604645e-08, %v119_v10 }
  0x70   :  { %v644_v8 = vadd.f32 -0.4999988, %v643_v0  ;;  %v651_v35 = vadd.f32 -0.16666654, %v650_v27  ;;  %v2061_v0 = vmul.f32 %v1915_v4, %v156_v61  ;;  %v328_v5 = vsub.s32 4, %v1949_v33 }
  0x71   :  { %v317_v7 = vor.u32 %v316_v9, %v315_v48  ;;  %v320_v15 = vshll.u32 %v319_v6, 23  ;;  %v2069_v42 = vmul.u32 %v717_v56, %v716_v24  ;;  %v719_v47 = vmul.u32 %v717_v56, %v715_v20 }
  0x72   :  { %v645_v59 = vmul.f32 %v644_v8, %v640_v62  ;;  %v652_v1 = vmul.f32 %v651_v35, %v640_v62  ;;  %v708_v62 = vsel %vm700_vm1, %v2008_v40, %v707_v19  ;;  %v718_v8 = vshrl.u32 %v713_v29, 16 }
  0x73   :  { %v321_v22 = vor.u32 4788187, %v320_v15  ;;  %v324_v18 = vcvt.s32.f32 %v317_v7  ;;  %v709_v32 = vsel %vm699_vm3, %v706_v13, %v708_v62  ;;  %1567 = vlog2.f32 %v123_v25 }
  0x74   :  { %v2025_v14 = vadd.f32 1.0, %v645_v59  ;;  %v653_v3 = vadd.f32 1.0, %v652_v1  ;;  %v739_v43 = vand.u32 65535, %v709_v32  ;;  %v740_v48 = vshrl.u32 %v709_v32, 16 }
  0x75   :  { %v322_v27 = vand.u32 2147483647, %v321_v22  ;;  %v720_v59 = vmul.u32 %v718_v8, %v715_v20  ;;  %v722_v61 = vmul.u32 %v718_v8, %v716_v24  ;;  %v133_v1 = vadd.f32 0.5, %v129_v2 }
  0x76   :  { %v2043_v50 = vmul.f32 %v653_v3, %v1972_v60  ;;  %v662_v28 = vxor.u32 2147483648, %v2025_v14  ;;  %v725_v6 = vshll.u32 %v2069_v42, 16  ;;  %v329_v13 = vsel %vm206_vm4, %v328_v5, %v1949_v33 }
  0x77   :  { %v325_v19 = vmul.f32 %v324_v18, %v322_v27  ;;  %v723_v9 = vshll.u32 %v720_v59, 16  ;;  %v682_v58 = vshrl.u32 %v1709_v37, %v1960_v55  ;;  %v742_v3 = vmul.u32 %v740_v48, %v715_v20 }
  0x78   :  { %v659_v17 = vxor.u32 2147483648, %v2043_v50  ;;  %v1286_v60 = vsel %vm1284_vm12, %v662_v28, %v2043_v50  ;;  %v743_v62 = vmul.u32 %v739_v43, %v716_v24  ;;  %v741_v26 = vmul.u32 %v739_v43, %v715_v20 }
  0x79   :  { %v326_v57 = vxor.u32 2147483648, %v325_v19  ;;  %vm727_vm7 = vc.u32 %v719_v47, %v723_v9  ;;  %v729_v2 = vadd.s32 %v723_v9, %v719_v47  ;;  %v724_v15 = vshrl.u32 %v720_v59, 16  ;;  %v1568_v18 = vpop.eup %1567 }
  0x7a   :  { %v1283_v35 = vsel %vm1281_vm14, %v2025_v14, %v659_v17  ;;  %v728_v33 = vsel %vm727_vm7, 1, %v1715_v51  ;;  %v745_v16 = vshll.u32 %v742_v3, 16  ;;  %v744_v22 = vmul.u32 %v740_v48, %v716_v24 }
  0x7b   :  { %v1287_v49 = vsel %vm1280_vm6, %v1283_v35, %v1286_v60  ;;  %v327_v45 = vsel %vm206_vm4, %v326_v57, %v325_v19  ;;  %v730_v29 = vadd.s32 %v728_v33, %v722_v61  ;;  %vm731_vm8 = vc.u32 %v729_v2, %v725_v6 }
  0x7c   :  { %v1288_v4 = vsel %vm655_vm2, nan, %v1287_v49  ;;  %v330_v7 = vsel %vm2035_vm5, %v1780_v12, %v327_v45  ;;  %v2091_v32 = vsel %vm2035_vm5, 0, %v329_v13  ;;  %v702_v20 = vsel %vm698_vm0, %v682_v58, %v2000_v36 }
  0x7d   :  { %v1446_v10 = vmul.f32 %v1288_v4, %v1958_v53  ;;  %v332_v55 = vmul.f32 %v330_v7, %v330_v7  ;;  %v732_v56 = vsel %vm731_vm8, 1, %v1715_v51  ;;  %v747_v60 = vshll.u32 %v743_v62, 16 }
  0x7e   :  { %v734_v5 = vadd.s32 %v732_v56, %v730_v29  ;;  %vm749_vm9 = vc.u32 %v741_v26, %v745_v16  ;;  %v703_v24 = vsel %vm701_vm13, %v2008_v40, 2102212464  ;;  %v726_v8 = vshrl.u32 %v2069_v42, 16 }
  0x7f   :  { %1456 = vrot.lane.b32.xlu1 %v1446_v10, %s1716_s5  ;;  %v333_v25 = vmul.f32 -0.001358992, %v332_v55  ;;  %v340_v27 = vmul.f32 -0.00019511016, %v332_v55  ;;  %v750_v21 = vsel %vm749_vm9, 1, %v1715_v51  ;;  %v751_v35 = vadd.s32 %v745_v16, %v741_v26 }
  0x80   :  { %v735_v49 = vadd.s32 %v734_v5, %v724_v15  ;;  %v752_v36 = vadd.s32 %v750_v21, %v744_v22  ;;  %v968_v19 = vadd.s32 3, %v2091_v32  ;;  %v746_v47 = vshrl.u32 %v742_v3, 16 }
  0x81   :  { %v334_v43 = vadd.f32 0.041655596, %v333_v25  ;;  %v341_v48 = vadd.f32 0.008332121, %v340_v27  ;;  %vm753_vm10 = vc.u32 %v751_v35, %v747_v60  ;;  %v137_v59 = vmul.f32 5.9604645e-08, %v133_v1 }
  0x82   :  { %v704_v40 = vsel %vm700_vm1, %v2004_v34, %v703_v24  ;;  %v754_v42 = vsel %vm753_vm10, 1, %v1715_v51  ;;  %v748_v10 = vshrl.u32 %v743_v62, 16  ;;  %v2109_v58 = vadd.s32 %v735_v49, %v726_v8 }
  0x83   :  { %v335_v4 = vmul.f32 %v334_v43, %v332_v55  ;;  %v342_v61 = vmul.f32 %v341_v48, %v332_v55  ;;  %v756_v57 = vadd.s32 %v754_v42, %v752_v36  ;;  %v2107_v9 = vmul.f32 6.2831855, %v137_v59 }
  0x84   :  { %v2111_v45 = vadd.s32 %v751_v35, %v747_v60  ;;  %v969_v3 = vand.u32 3, %v968_v19  ;;  %v705_v1 = vsel %vm699_vm3, %v702_v20, %v704_v40  ;;  %v158_v34 = vmul.f32 %v2061_v0, %v1900_v31 }
  0x85   :  { %v336_v6 = vadd.f32 -0.4999988, %v335_v4  ;;  %v343_v13 = vadd.f32 -0.16666654, %v342_v61  ;;  %v757_v2 = vadd.s32 %v756_v57, %v746_v47  ;;  %v361_v26 = vand.u32 2139095040, %v2107_v9 }
  0x86   :  { %vm159_vm11 = vcmp.eq.f32.partialorder %v1900_v31, inf  ;;  %v162_v33 = vand.u32 2147483648, %v1900_v31  ;;  %v759_v63 = vmul.u32 %v2002_v38, %v705_v1  ;;  %vm761_vm12 = vc.u32 %v2109_v58, %v2111_v45 }
  0x87   :  { %v337_v62 = vmul.f32 %v336_v6, %v332_v55  ;;  %v344_v15 = vmul.f32 %v343_v13, %v332_v55  ;;  %v758_v16 = vadd.s32 %v757_v2, %v748_v10  ;;  %v362_v29 = vshrl.u32 %v361_v26, 23 }
  0x88   :  { %vm161_vm13 = vcmp.eq.f32.partialorder %v1900_v31, 0.0  ;;  %vm974_vm14 = vcmp.eq.s32.totalorder %v969_v3, 2  ;;  %v160_v55 = vsel %vm159_vm11, %v1900_v31, %v158_v34  ;;  %v147_v27 = vmul.f32 0.6931472, %v1568_v18 }
  0x89   :  { %v2120_v22 = vadd.f32 1.0, %v337_v62  ;;  %v345_v56 = vadd.f32 1.0, %v344_v15  ;;  %v762_v0 = vadd.s32 1, %v758_v16  ;;  %v1522_v20 = vadd.s32 4294967169, %v362_v29 }
  0x8a   :  { %vm970_vm15 = vcmp.lt.s32.totalorder %v969_v3, 2  ;;  %vm971_vm0 = vcmp.eq.s32.totalorder %v969_v3, 0  ;;  %v358_v35 = vand.u32 2147483647, %v2107_v9  ;;  %vm347_vm1 = vweird.f32 %v1780_v12 }
  0x8b   :  { %v2127_v60 = vmul.f32 %v345_v56, %v330_v7  ;;  %v354_v25 = vxor.u32 2147483648, %v2120_v22  ;;  %v763_v5 = vsel %vm761_vm12, %v762_v0, %v758_v16  ;;  %v368_v24 = vadd.s32 1, %v1522_v20 }
  0x8c   :  { %v764_v21 = vadd.s32 %v763_v5, %v759_v63  ;;  %v2138_v7 = vsel %vm161_vm13, %v162_v33, %v160_v55  ;;  %v2145_v47 = vmul.f32 -2.0, %v147_v27  ;;  %v365_v31 = vand.u32 8388607, %v358_v35 }
  0x8d   :  { %v351_v38 = vxor.u32 2147483648, %v2127_v60  ;;  %v976_v8 = vsel %vm974_vm14, %v354_v25, %v2127_v60  ;;  %vm369_vm3 = vcmp.gt.s32.totalorder %v368_v24, 0  ;;  %vm668_vm10 = vcmp.lt.s32.totalorder %v1822_v23, 0 }
  0x8e   :  { %v765_v43 = vadd.s32 536870912, %v764_v21  ;;  %v370_v48 = vsel %vm369_vm3, %v368_v24, 0  ;;  %v366_v34 = vor.u32 8388608, %v365_v31  ;;  %1569 = vrsqrt.f32 %v2145_v47 }
  0x8f   :  { %v973_v18 = vsel %vm971_vm0, %v2120_v22, %v351_v38  ;;  %v372_v36 = vand.u32 31, %v370_v48  ;;  %v2160_v13 = vshrl.u32 %v370_v48, 5  ;;  %vm195_vm3 = vcmp.eq.f32.partialorder %v2145_v47, inf }
  0x90   :  { %v977_v49 = vsel %vm970_vm15, %v973_v18, %v976_v8  ;;  %v2147_v59 = vshrl.u32 %v765_v43, 30  ;;  %v2184_v63 = vshll.u32 %v366_v34, 8  ;;  %v760_v43 = vadd.s32 %v2111_v45, %v2109_v58 }
  0x91   :  { %v978_v19 = vsel %vm347_vm1, nan, %v977_v49  ;;  %v2152_v61 = vsub.s32 32, %v372_v36  ;;  %v375_v40 = vshll.u32 %v1709_v37, %v372_v36  ;;  %v378_v42 = vshll.u32 %v1710_v39, %v372_v36 }
  0x92   :  { %v1444_v4 = vmul.f32 %v978_v19, %v2138_v7  ;;  %v767_v10 = vshll.u32 %v2147_v59, 30  ;;  %v381_v57 = vshll.u32 %v1711_v41, %v372_v36  ;;  %v384_v6 = vshll.u32 %v1712_v44, %v372_v36 }
  0x93   :  { %v376_v3 = vshrl.u32 %v1710_v39, %v2152_v61  ;;  %v379_v1 = vshrl.u32 %v1711_v41, %v2152_v61  ;;  %v382_v2 = vshrl.u32 %v1712_v44, %v2152_v61  ;;  %v385_v62 = vshrl.u32 %v1713_v46, %v2152_v61 }
  0x94   :  { %1452 = vrot.lane.b32.xlu0 %v1444_v4, %s1716_s5  ;;  %v768_v26 = vsub.s32 %v764_v21, %v767_v10  ;;  %v387_v15 = vshll.u32 %v1713_v46, %v372_v36  ;;  %v388_v44 = vshrl.u32 %v1714_v54, %v2152_v61  ;;  %vm390_vm5 = vcmp.lt.s32.totalorder %v2160_v13, 1  ;;  %v2201_v24 = vpop.eup %1569 }
  0x95   :  { %v2172_v33 = vor.u32 %v376_v3, %v375_v40  ;;  %v2174_v16 = vor.u32 %v379_v1, %v378_v42  ;;  %v2176_v39 = vor.u32 %v382_v2, %v381_v57  ;;  %v386_v29 = vor.u32 %v385_v62, %v384_v6 }
  0x96   :  { %vm769_vm4 = vcmp.lt.s32.totalorder %v768_v26, 0  ;;  %v770_v41 = vsub.s32 0, %v768_v26  ;;  %vm392_vm6 = vcmp.lt.s32.totalorder %v2160_v13, 3  ;;  %vm393_vm7 = vcmp.lt.s32.totalorder %v2160_v13, 4 }
  0x97   :  { %v389_v56 = vor.u32 %v388_v44, %v387_v15  ;;  %vm391_vm8 = vcmp.lt.s32.totalorder %v2160_v13, 2  ;;  %v398_v20 = vsel %vm390_vm5, %v2172_v33, %v2174_v16  ;;  %v399_v54 = vsel %vm393_vm7, %v386_v29, 920167782 }
  0x98   :  { %v771_v46 = vsel %vm769_vm4, %v770_v41, %v768_v26  ;;  %v400_v55 = vsel %vm392_vm6, %v2176_v39, %v399_v54  ;;  %v402_v27 = vsel %vm390_vm5, %v2174_v16, %v2176_v39  ;;  %v407_v49 = vand.u32 65535, %v2184_v63  ;;  %v109_v41 = vld [vmem:[#allocation9 + $0x8] sm:$0xff] }
  0x99   :  { %v772_v0 = vclz %v771_v46  ;;  %v403_v5 = vsel %vm393_vm7, %v389_v56, 1326507024  ;;  %v401_v21 = vsel %vm391_vm8, %v398_v20, %v400_v55  ;;  %v408_v19 = vshrl.u32 %v2184_v63, 16 }
  0x9a   :  { %v404_v18 = vsel %vm392_vm6, %v386_v29, %v403_v5  ;;  %v432_v36 = vshrl.u32 %v401_v21, 16  ;;  %v189_v40 = vmul.f32 %v2201_v24, %v2145_v47  ;;  %v431_v3 = vand.u32 65535, %v401_v21 }
  0x9b   :  { %v1529_v8 = vadd.s32 4294967294, %v772_v0  ;;  %v405_v48 = vsel %vm391_vm8, %v402_v27, %v404_v18  ;;  %vm2228_vm15 = vcmp.le.f32.partialorder %v666_v30, 0.7853982 }
  0x9c   :  { %v409_v31 = vand.u32 65535, %v405_v48  ;;  %v410_v4 = vshrl.u32 %v405_v48, 16  ;;  %v434_v1 = vmul.u32 %v432_v36, %v407_v49  ;;  %v190_v15 = vmul.f32 %v2201_v24, %v189_v40 }
  0x9d   :  { %vm1530_vm9 = vcmp.lt.s32.totalorder %v1529_v8, 0  ;;  %v435_v20 = vmul.u32 %v431_v3, %v408_v19  ;;  %v433_v54 = vmul.u32 %v431_v3, %v407_v49  ;;  %v436_v48 = vmul.u32 %v432_v36, %v408_v19 }
  0x9e   :  { %v775_v42 = vsel %vm1530_vm9, 0, %v1529_v8  ;;  %v411_v58 = vmul.u32 %v409_v31, %v407_v49  ;;  %v412_v45 = vmul.u32 %v410_v4, %v407_v49  ;;  %v413_v62 = vmul.u32 %v409_v31, %v408_v19 }
  0x9f   :  { %v776_v10 = vsub.s32 32, %v775_v42  ;;  %v777_v57 = vshll.u32 %v768_v26, %v775_v42  ;;  %v780_v6 = vsub.s32 4294967266, %v775_v42  ;;  %v414_v29 = vmul.u32 %v410_v4, %v408_v19 }
  0xa0   :  { %v415_v44 = vshll.u32 %v412_v45, 16  ;;  %v417_v0 = vshll.u32 %v413_v62, 16  ;;  %v437_v55 = vshll.u32 %v434_v1, 16  ;;  %v113_v8 = vcvt.s32.f32 %v109_v41 }
  0xa1   :  { %v778_v2 = vshrl.u32 %v760_v43, %v776_v10  ;;  %v781_v34 = vadd.s32 127, %v780_v6  ;;  %v416_v18 = vshrl.u32 %v412_v45, 16  ;;  %v790_v4 = vsub.s32 4, %v2147_v59 }
  0xa2   :  { %vm419_vm11 = vc.u32 %v411_v58, %v415_v44  ;;  %v421_v26 = vadd.s32 %v415_v44, %v411_v58  ;;  %v439_v42 = vshll.u32 %v435_v20, 16  ;;  %v374_v10 = vshrl.u32 %v1709_v37, %v2152_v61 }
  0xa3   :  { %v779_v46 = vor.u32 %v778_v2, %v777_v57  ;;  %v782_v56 = vshll.u32 %v781_v34, 23  ;;  %v420_v21 = vsel %vm419_vm11, 1, %v1715_v51  ;;  %vm441_vm13 = vc.u32 %v433_v54, %v437_v55 }
  0xa4   :  { %v422_v43 = vadd.s32 %v420_v21, %v414_v29  ;;  %vm423_vm12 = vc.u32 %v421_v26, %v417_v0  ;;  %v443_v57 = vadd.s32 %v437_v55, %v433_v54  ;;  %v395_v3 = vsel %vm393_vm7, %v2176_v39, 2102212464 }
  0xa5   :  { %v783_v27 = vor.u32 4788187, %v782_v56  ;;  %v786_v5 = vcvt.s32.f32 %v779_v46  ;;  %v424_v40 = vsel %vm423_vm12, 1, %v1715_v51  ;;  %v418_v58 = vshrl.u32 %v413_v62, 16 }
  0xa6   :  { %v426_v49 = vadd.s32 %v424_v40, %v422_v43  ;;  %v442_v36 = vsel %vm441_vm13, 1, %v1715_v51  ;;  %v438_v45 = vshrl.u32 %v434_v1, 16  ;;  %vm445_vm14 = vc.u32 %v443_v57, %v439_v42 }
  0xa7   :  { %v784_v31 = vand.u32 2147483647, %v783_v27  ;;  %v444_v2 = vadd.s32 %v442_v36, %v436_v48  ;;  %v446_v61 = vsel %vm445_vm14, 1, %v1715_v51  ;;  %v191_v41 = vmul.f32 0.5, %v190_v15 }
  0xa8   :  { %v427_v19 = vadd.s32 %v426_v49, %v416_v18  ;;  %v394_v39 = vsel %vm390_vm5, %v374_v10, %v2172_v33  ;;  %v396_v1 = vsel %vm392_vm6, %v2174_v16, %v395_v3  ;;  %v791_v30 = vsel %vm668_vm10, %v790_v4, %v2147_v59 }
  0xa9   :  { %v787_v6 = vmul.f32 %v786_v5, %v784_v31  ;;  %v448_v62 = vadd.s32 %v446_v61, %v444_v2  ;;  %v117_v44 = vadd.f32 0.5, %v113_v8  ;;  %v440_v46 = vshrl.u32 %v435_v20, 16 }
  0xaa   :  { %v428_v15 = vadd.s32 %v427_v19, %v418_v58  ;;  %v447_v33 = vadd.s32 %v443_v57, %v439_v42  ;;  %v397_v16 = vsel %vm391_vm8, %v394_v39, %v396_v1  ;;  %v2251_v26 = vsel %vm2228_vm15, 0, %v791_v30 }
  0xab   :  { %v788_v37 = vxor.u32 2147483648, %v787_v6  ;;  %v449_v56 = vadd.s32 %v448_v62, %v438_v45  ;;  %v192_v27 = vsub.f32 1.5, %v191_v41  ;;  %v121_v20 = vmul.f32 5.9604645e-08, %v117_v44 }
  0xac   :  { %v451_v5 = vmul.u32 %v2184_v63, %v397_v16  ;;  %vm453_vm0 = vc.u32 %v428_v15, %v447_v33  ;;  %v1433_v43 = vadd.s32 3, %v2251_v26  ;;  %vm197_vm5 = vcmp.eq.f32.partialorder %v2145_v47, 0.0 }
  0xad   :  { %v789_v29 = vsel %vm668_vm10, %v788_v37, %v787_v6  ;;  %v450_v59 = vadd.s32 %v449_v56, %v440_v46  ;;  %v193_v4 = vmul.f32 %v2201_v24, %v192_v27  ;;  %1571 = vlog2.f32 %v121_v20 }
  0xae   :  { %v792_v51 = vsel %vm2228_vm15, %v1822_v23, %v789_v29  ;;  %v1434_v49 = vand.u32 3, %v1433_v43  ;;  %v198_v24 = vand.u32 2147483648, %v2145_v47  ;;  %vm809_vm8 = vweird.f32 %v1822_v23 }
  0xaf   :  { %v794_v0 = vmul.f32 %v792_v51, %v792_v51  ;;  %v454_v18 = vadd.s32 1, %v450_v59  ;;  %v194_v63 = vmul.f32 %v193_v4, %v2145_v47  ;;  %vm360_vm11 = vcmp.lt.s32.totalorder %v2107_v9, 0 }
  0xb0   :  { %vm1439_vm4 = vcmp.eq.s32.totalorder %v1434_v49, 2  ;;  %vm1436_vm6 = vcmp.eq.s32.totalorder %v1434_v49, 0  ;;  %vm1435_vm7 = vcmp.lt.s32.totalorder %v1434_v49, 2  ;;  %vm359_vm12 = vcmp.le.f32.partialorder %v358_v35, 0.7853982 }
  0xb1   :  { %v795_v54 = vmul.f32 -0.001358992, %v794_v0  ;;  %v802_v55 = vmul.f32 -0.00019511016, %v794_v0  ;;  %v455_v31 = vsel %vm453_vm0, %v454_v18, %v450_v59  ;;  %v196_v61 = vsel %vm195_vm3, %v2145_v47, %v194_v63 }
  0xb2   :  { %v456_v40 = vadd.s32 %v455_v31, %v451_v5  ;;  %v2271_v30 = vsel %vm197_vm5, %v198_v24, %v196_v61 }
  0xb3   :  { %v796_v8 = vadd.f32 0.041655596, %v795_v54  ;;  %v803_v21 = vadd.f32 0.008332121, %v802_v55  ;;  %v1572_v45 = vpop.eup %1571  ;;  %v452_v55 = vadd.s32 %v447_v33, %v428_v15 }
  0xb4   :  { %v457_v57 = vadd.s32 536870912, %v456_v40  ;;  %v143_v62 = vmul.f32 0.6931472, %v1572_v45 }
  0xb5   :  { %v797_v48 = vmul.f32 %v796_v8, %v794_v0  ;;  %v804_v13 = vmul.f32 %v803_v21, %v794_v0 }
  0xb6   :  { %v458_v58 = vshrl.u32 %v457_v57, 30  ;;  %v2278_v56 = vmul.f32 -2.0, %v143_v62 }
  0xb7   :  { %v798_v42 = vadd.f32 -0.4999988, %v797_v48  ;;  %v805_v10 = vadd.f32 -0.16666654, %v804_v13 }
  0xb8   :  { %v459_v2 = vshll.u32 %v458_v58, 30  ;;  %1573 = vrsqrt.f32 %v2278_v56  ;;  %v482_v15 = vsub.s32 4, %v458_v58  ;;  %vm171_vm13 = vcmp.eq.f32.partialorder %v2278_v56, inf }
  0xb9   :  { %v799_v6 = vmul.f32 %v798_v42, %v794_v0  ;;  %v806_v3 = vmul.f32 %v805_v10, %v794_v0  ;;  %vm173_vm15 = vcmp.eq.f32.partialorder %v2278_v56, 0.0 }
  0xba   :  { %v460_v41 = vsub.s32 %v456_v40, %v459_v2 }
  0xbb   :  { %v2258_v36 = vadd.f32 1.0, %v799_v6  ;;  %v807_v19 = vadd.f32 1.0, %v806_v3  ;;  %v483_v6 = vsel %vm360_vm11, %v482_v15, %v458_v58 }
  0xbc   :  { %vm461_vm9 = vcmp.lt.s32.totalorder %v460_v41, 0  ;;  %v462_v29 = vsub.s32 0, %v460_v41 }
  0xbd   :  { %v2261_v34 = vmul.f32 %v807_v19, %v792_v51  ;;  %v816_v37 = vxor.u32 2147483648, %v2258_v36  ;;  %v2288_v19 = vsel %vm359_vm12, 0, %v483_v6 }
  0xbe   :  { %v463_v46 = vsel %vm461_vm9, %v462_v29, %v460_v41  ;;  %v1574_v18 = vpop.eup %1573 }
  0xbf   :  { %v813_v39 = vxor.u32 2147483648, %v2261_v34  ;;  %v1441_v1 = vsel %vm1439_vm4, %v816_v37, %v2261_v34  ;;  %v464_v0 = vclz %v463_v46  ;;  %v165_v4 = vmul.f32 %v1574_v18, %v2278_v56 }
  0xc0   :  { %vm501_vm4 = vweird.f32 %v2107_v9 }
  0xc1   :  { %v1438_v47 = vsel %vm1436_vm6, %v2258_v36, %v813_v39  ;;  %v1523_v54 = vadd.s32 4294967294, %v464_v0  ;;  %v166_v10 = vmul.f32 %v1574_v18, %v165_v4 }
  0xc2   :  { %v1442_v44 = vsel %vm1435_vm7, %v1438_v47, %v1441_v1  ;;  %v1123_v1 = vadd.s32 3, %v2288_v19 }
  0xc3   :  { %v1443_v51 = vsel %vm809_vm8, nan, %v1442_v44  ;;  %vm1524_vm10 = vcmp.lt.s32.totalorder %v1523_v54, 0  ;;  %v167_v57 = vmul.f32 0.5, %v166_v10 }
  0xc4   :  { %v1447_v16 = vmul.f32 %v1443_v51, %v2271_v30  ;;  %v467_v59 = vsel %vm1524_vm10, 0, %v1523_v54  ;;  %v1124_v46 = vand.u32 3, %v1123_v1 }
  0xc5   :  { %v468_v27 = vsub.s32 32, %v467_v59  ;;  %v469_v20 = vshll.u32 %v460_v41, %v467_v59  ;;  %v472_v5 = vsub.s32 4294967266, %v467_v59  ;;  %v168_v24 = vsub.f32 1.5, %v167_v57 }
  0xc6   :  { %1458 = vrot.lane.b32.xlu1 %v1447_v16, %s1716_s5  ;;  %vm1129_vm14 = vcmp.eq.s32.totalorder %v1124_v46, 2  ;;  %vm1126_vm0 = vcmp.eq.s32.totalorder %v1124_v46, 0  ;;  %vm1125_vm3 = vcmp.lt.s32.totalorder %v1124_v46, 2 }
  0xc7   :  { %v470_v8 = vshrl.u32 %v452_v55, %v468_v27  ;;  %v473_v21 = vadd.s32 127, %v472_v5  ;;  %v169_v47 = vmul.f32 %v1574_v18, %v168_v24  ;;  %v174_v55 = vand.u32 2147483648, %v2278_v56  ;;  %v94_v24 = vld [vmem:[#allocation7 + $0x18] sm:$0xff] }
  0xc9   :  { %v471_v43 = vor.u32 %v470_v8, %v469_v20  ;;  %v474_v48 = vshll.u32 %v473_v21, 23  ;;  %v170_v0 = vmul.f32 %v169_v47, %v2278_v56  ;;  %v1471_v47 = vld [vmem:[#allocation4 + $0x10] sm:$0xff] }
  0xcb   :  { %v475_v13 = vor.u32 4788187, %v474_v48  ;;  %v478_v31 = vcvt.s32.f32 %v471_v43  ;;  %v172_v20 = vsel %vm171_vm13, %v2278_v56, %v170_v0 }
  0xcc   :  { %v2306_v21 = vsel %vm173_vm15, %v174_v55, %v172_v20 }
  0xcd   :  { %v476_v40 = vand.u32 2147483647, %v475_v13  ;;  %v348_v13 = vand.u32 3, %v2091_v32 }
  0xcf   :  { %v479_v42 = vmul.f32 %v478_v31, %v476_v40  ;;  %v656_v31 = vand.u32 3, %v1942_v52  ;;  %vm350_vm5 = vcmp.eq.s32.totalorder %v348_v13, 0  ;;  %vm353_vm6 = vcmp.eq.s32.totalorder %v348_v13, 2 }
  0xd0   :  { %vm349_vm10 = vcmp.lt.s32.totalorder %v348_v13, 2  ;;  %v352_v4 = vsel %vm350_vm5, %v2120_v22, %v351_v38  ;;  %v355_v40 = vsel %vm353_vm6, %v354_v25, %v2127_v60 }
  0xd1   :  { %v480_v33 = vxor.u32 2147483648, %v479_v42  ;;  %vm658_vm7 = vcmp.eq.s32.totalorder %v656_v31, 0  ;;  %vm661_vm9 = vcmp.eq.s32.totalorder %v656_v31, 2 }
  0xd2   :  { %v660_v32 = vsel %vm658_vm7, %v2025_v14, %v659_v17  ;;  %v663_v52 = vsel %vm661_vm9, %v662_v28, %v2043_v50  ;;  %v93_v17 = vld [vmem:[#allocation7 + $0x10] sm:$0xff]  ;;  %v95_v14 = vstv %s2371_s0  ;;  %v810_v50 = vand.u32 3, %v2251_v26  ;;  %s1718_s0 = smov [#allocation12]  }
  0xd3   :  { %v481_v49 = vsel %vm360_vm11, %v480_v33, %v479_v42  ;;  %vm657_vm11 = vcmp.lt.s32.totalorder %v656_v31, 2  ;;  %v356_v42 = vsel %vm349_vm10, %v352_v4, %v355_v40  ;;  %v1717_v28 = vmov 0.0   ;;  %v1470_v4 = vld [vmem:[#allocation4 + $0x8] sm:$0xff] }
  0xd4   :  { %v484_v3 = vsel %vm359_vm12, %v2107_v9, %v481_v49  ;;  %v357_v15 = vsel %vm347_vm1, nan, %v356_v42  ;;  %v664_v33 = vsel %vm657_vm11, %v660_v32, %v663_v52  ;;  %vm1464_vm12 = vcmask 523264   ;;  %v91_v49 = vld [vmem:[#allocation7] sm:$0xff] }
  0xd5   :  { %v486_v63 = vmul.f32 %v484_v3, %v484_v3  ;;  %v665_v38 = vsel %vm655_vm2, nan, %v664_v33  ;;  %v820_v22 = vmul.f32 %v357_v15, %v2138_v7  ;;  %vm96_vm13 = vcmp.lt.s32.totalorder %v91_v49, %v95_v14 }
  0xd6   :  { %v822_v25 = vmul.f32 %v665_v38, %v1958_v53  ;;  %vm98_vm1 = vcmp.lt.s32.totalorder %v93_v17, %v95_v14  ;;  %v1515_v7 = vsel %vm96_vm13, 1.0, %v1717_v28  ;;  %vm812_vm2 = vcmp.eq.s32.totalorder %v810_v50, 0 }
  0xd7   :  { %v487_v45 = vmul.f32 -0.001358992, %v486_v63  ;;  %v494_v2 = vmul.f32 -0.00019511016, %v486_v63  ;;  %vm815_vm15 = vcmp.eq.s32.totalorder %v810_v50, 2  ;;  %v1473_v53 = vstv %s2372_s1  ;;  %s1498_s1 = sshll.u32 %s1718_s0, 4  ;;  %s1499_s1 = int_to_ptr.vmem [resolvable:$true] %s1498_s1 }
  0xd8   :  { %v1517_v57 = vsel %vm98_vm1, 1.0, %v1717_v28  ;;  %v814_v26 = vsel %vm812_vm2, %v2258_v36, %v813_v39  ;;  %v817_v6 = vsel %vm815_vm15, %v816_v37, %v2261_v34 }
  0xd9   :  { %v488_v61 = vadd.f32 0.041655596, %v487_v45  ;;  %v495_v41 = vadd.f32 0.008332121, %v494_v2 }
  0xdb   :  { %v489_v62 = vmul.f32 %v488_v61, %v486_v63  ;;  %v496_v29 = vmul.f32 %v495_v41, %v486_v63 }
  0xdd   :  { %v490_v35 = vadd.f32 -0.4999988, %v489_v62  ;;  %v497_v44 = vadd.f32 -0.16666654, %v496_v29  ;;  %v1469_v62 = vld [vmem:[#allocation4] sm:$0xff] }
  0xdf   :  { %v491_v51 = vmul.f32 %v490_v35, %v486_v63  ;;  %v498_v58 = vmul.f32 %v497_v44, %v486_v63 }
  0xe1   :  { %v2293_v16 = vadd.f32 1.0, %v491_v51  ;;  %v499_v54 = vadd.f32 1.0, %v498_v58  ;;  %v1472_v58 = vld [vmem:[#allocation4 + $0x18] sm:$0xff] }
  0xe3   :  { %v2296_v59 = vmul.f32 %v499_v54, %v484_v3  ;;  %v508_v27 = vxor.u32 2147483648, %v2293_v16 }
  0xe5   :  { %v505_v5 = vxor.u32 2147483648, %v2296_v59  ;;  %v1131_v8 = vsel %vm1129_vm14, %v508_v27, %v2296_v59  ;;  %vm811_vm14 = vcmp.lt.s32.totalorder %v810_v50, 2 }
  0xe6   :  { %v818_v63 = vsel %vm811_vm14, %v814_v26, %v817_v6 }
  0xe7   :  { %v1128_v18 = vsel %vm1126_vm0, %v2293_v16, %v505_v5  ;;  %v819_v61 = vsel %vm809_vm8, nan, %v818_v63  ;;  %vm99_vm0 = vcmp.lt.s32.totalorder %v94_v24, %v95_v14 }
  0xe8   :  { %v1132_v43 = vsel %vm1125_vm3, %v1128_v18, %v1131_v8  ;;  %v823_v1 = vmul.f32 %v819_v61, %v2271_v30  ;;  %v1518_v35 = vsel %vm99_vm0, 1.0, %v1717_v28  ;;  %v502_v30 = vand.u32 3, %v2288_v19  ;;  %v92_v18 = vld [vmem:[#allocation7 + $0x8] sm:$0xff] }
  0xe9   :  { %v1133_v56 = vsel %vm501_vm4, nan, %v1132_v43  ;;  %vm97_vm6 = vcmp.lt.s32.totalorder %v92_v18, %v95_v14 }
  0xea   :  { %v1445_v48 = vmul.f32 %v1133_v56, %v2306_v21  ;;  %vm504_vm8 = vcmp.eq.s32.totalorder %v502_v30, 0  ;;  %vm507_vm3 = vcmp.eq.s32.totalorder %v502_v30, 2  ;;  %vm503_vm5 = vcmp.lt.s32.totalorder %v502_v30, 2 }
  0xeb   :  { %v506_v54 = vsel %vm504_vm8, %v2293_v16, %v505_v5  ;;  %v509_v55 = vsel %vm507_vm3, %v508_v27, %v2296_v59  ;;  %v1516_v56 = vsel %vm97_vm6, 1.0, %v1717_v28 }
  0xec   :  { %1454 = vrot.lane.b32.xlu0 %v1445_v48, %s1716_s5  ;;  %v510_v20 = vsel %vm503_vm5, %v506_v54, %v509_v55 }
  0xed   :  { %v511_v8 = vsel %vm501_vm4, nan, %v510_v20 }
  0xee   :  { %v821_v43 = vmul.f32 %v511_v8, %v2306_v21 }
  0xf1   :  { %v1457_v10 = vpop.permute.xlu1 %1456 }
  0xf2   :  { %v1467_v11 = vsel %vm1464_vm12, %v822_v25, %v1457_v10 }
  0xf3   :  { %v1476_v45 = vmul.f32 %v1473_v53, %v1467_v11 }
  0xf5   :  { %v1480_v29 = vmul.f32 %v1517_v57, %v1476_v45 }
  0xf7   :  { %v1484_v34 = vadd.f32 1.0, %v1480_v29 }
  0xf9   :  { %v1488_v46 = vmul.f32 %v1484_v34, %v1471_v47 }
  0xfb   :  { %1492 = vst [vmem:[#allocation12 + $0x10] sm:$0xff] %v1488_v46 }
 0x106   :  { %v1453_v60 = vpop.permute.xlu0 %1452 }
 0x107   :  { %v1465_v12 = vsel %vm1464_vm12, %v820_v22, %v1453_v60 }
 0x108   :  { %v1474_v3 = vmul.f32 %v1473_v53, %v1465_v12 }
 0x10a   :  { %v1478_v41 = vmul.f32 %v1515_v7, %v1474_v3 }
 0x10c   :  { %v1482_v39 = vadd.f32 1.0, %v1478_v41 }
 0x10e   :  { %v1486_v44 = vmul.f32 %v1482_v39, %v1469_v62 }
 0x110   :  { %1490 = vst [vmem:[#allocation12] sm:$0xff] %v1486_v44 }
 0x138   :  { %v1459_v2 = vpop.permute.xlu1 %1458 }
 0x139   :  { %v1468_v36 = vsel %vm1464_vm12, %v823_v1, %v1459_v2 }
 0x13a   :  { %v1477_v37 = vmul.f32 %v1473_v53, %v1468_v36 }
 0x13c   :  { %v1481_v51 = vmul.f32 %v1518_v35, %v1477_v37 }
 0x13e   :  { %v1485_v23 = vadd.f32 1.0, %v1481_v51 }
 0x140   :  { %v1489_v0 = vmul.f32 %v1485_v23, %v1472_v58 }
 0x142   :  { %1493 = vst [vmem:[#allocation12 + $0x18] sm:$0xff] %v1489_v0 }
 0x15e   :  { %v1455_v19 = vpop.permute.xlu0 %1454 }
 0x15f   :  { %v1466_v48 = vsel %vm1464_vm12, %v821_v43, %v1455_v19 }
 0x160   :  { %v1475_v13 = vmul.f32 %v1473_v53, %v1466_v48 }
 0x162   :  { %v1479_v31 = vmul.f32 %v1516_v56, %v1475_v13 }
 0x164   :  { %v1483_v16 = vadd.f32 1.0, %v1479_v31 }
 0x166   :  { %v1487_v9 = vmul.f32 %v1483_v16, %v1470_v4 }
 0x168   :  { %1491 = vst [vmem:[#allocation12 + $0x8] sm:$0xff] %v1487_v9 }
 0x169   :  { %1506 = dma.vmem_to_hbm [thread:$0]  %s1499_s1, 512, %s1501_s22, [#allocation6], %s1704_s29, %s1704_s29, %s1705_s30  }
 0x16a   :  { %1701 = dma.done.wait [#allocation6], 512  }
 0x16b   :  { %1702 = vsyncadd [#allocation6], 4294966784 }
 0x16c   :  { %1511 = vsyncpa [#allocation5], 1 }
 0x16d   :  { %1512 = vsyncpa [#allocation8], 1 }
 0x16e   :  { %1513 = vsyncpa [#allocation11], 1 }
 0x16f   :  { %1514 = vsyncpa [#allocation6], 1 }

</bundles_post_ra>
